<compile_context>
chip_gen: v6e
topology: v6e:2x2x1
jax: 0.10.0
libtpu: 0.0.40
codegen_flags: <defaults>
</compile_context>

<pallas_src>
import jax
import jax.numpy as jnp
from jax.experimental import pallas as pl
from jax.experimental.pallas import tpu as pltpu

LANE = 128


def gcn_classifier_kernel(a_ref, x_ref, w1_ref, w2_ref, wfc_ref,
                          bias_ref, alpha_ref, out_ref):
    gb, n, f_in = x_ref.shape
    lane = w1_ref.shape[1]
    alpha = alpha_ref[0, 0]                              # PReLU slope from SMEM
    a = a_ref[...]                                       # (Gb, N, N) bf16

    # --- GCNConv 1: per-graph aggregation (tiny), W-matmul fused across graphs ---
    # re-associated as (A_hat @ X) @ W1 since F_in=32 < h1=128
    ax = jnp.einsum("gij,gjf->gif", a, x_ref[...],
                    preferred_element_type=jnp.float32)                # (Gb, N, F_in) f32
    ax2 = ax.reshape(gb * n, f_in).astype(jnp.bfloat16)                # (Gb*N, F_in)
    h1 = jnp.dot(ax2, w1_ref[...],
                 preferred_element_type=jnp.float32) + bias_ref[0:1, :]  # (Gb*N, 128) f32
    h1 = jnp.where(h1 >= 0.0, h1, alpha * h1)
    # TODO(synk): F.dropout in the reference defaults to training=True (stochastic);
    # implemented as identity (eval-mode dropout) for determinism.

    # --- GCNConv 2: W-matmul fused across graphs, then per-graph aggregation ---
    xw2 = jnp.dot(h1.astype(jnp.bfloat16), w2_ref[...],
                  preferred_element_type=jnp.float32)                  # (Gb*N, 128) f32
    xw2_g = xw2.reshape(gb, n, lane).astype(jnp.bfloat16)              # (Gb, N, 128)
    h2 = jnp.einsum("gij,gjk->gik", a, xw2_g,
                    preferred_element_type=jnp.float32)                # (Gb, N, 128) f32
    h2 = h2.reshape(gb * n, lane) + bias_ref[1:2, :]
    h2 = jnp.where(h2 >= 0.0, h2, alpha * h2)

    # --- fc fused across graphs, lane-dense 128-wide padded slab, bf16 writeback ---
    out = jnp.dot(h2.astype(jnp.bfloat16), wfc_ref[...],
                  preferred_element_type=jnp.float32) + bias_ref[2:3, :]
    out_ref[...] = out.reshape(gb, n, lane).astype(out_ref.dtype)


def _pick_graphs_per_step(num_graphs, num_nodes, target_rows=256, min_steps=2):
    """Largest Gb dividing G with Gb*N <= target_rows, preferring >= min_steps grid steps."""
    divisors = [d for d in range(1, num_graphs + 1) if num_graphs % d == 0]
    fits = [d for d in divisors if d * num_nodes <= target_rows]
    if not fits:
        return 1
    with_steps = [d for d in fits if num_graphs // d >= min_steps]
    return max(with_steps) if with_steps else max(fits)


def build_normalized_adjacency(edge_index, num_nodes):
    """Dense GCN-normalized adjacency: D^-1/2 (A + I) D^-1/2, aggregation at dst."""
    src, dst = edge_index[0], edge_index[1]
    a = jnp.zeros((num_nodes, num_nodes), jnp.float32)
    a = a.at[dst, src].add(1.0)                       # message j -> i lands in row i
    a = a + jnp.eye(num_nodes, dtype=jnp.float32)     # self loops
    deg = jnp.sum(a, axis=1)
    d_inv_sqrt = jnp.where(deg > 0, 1.0 / jnp.sqrt(deg), 0.0)
    return d_inv_sqrt[:, None] * a * d_inv_sqrt[None, :]


def gcn_classifier_forward(x_b, a_b, params, graphs_per_step=None):
    """x_b: (G, N, F_in) f32, a_b: (G, N, N) f32 normalized adjacency."""
    g_count, n, f_in = x_b.shape
    h1 = params["w1"].shape[1]
    h2 = params["w2"].shape[1]
    out_dim = params["b_fc"].shape[-1]
    assert h1 == LANE, "kernel assumes h1 == 128"
    assert n % 8 == 0, "in-kernel reshapes assume N is a multiple of the sublane tile (8)"

    gb = graphs_per_step if graphs_per_step is not None else _pick_graphs_per_step(g_count, n)
    assert g_count % gb == 0
    steps = g_count // gb

    # Zero-pad the small dims (h2=16, out_dim=8) up to one 128-lane slab.
    # Padded lanes stay exactly 0 through PReLU and contribute nothing to fc.
    w2_pad = jnp.zeros((h1, LANE), jnp.float32).at[:, :h2].set(params["w2"])
    wfc_pad = jnp.zeros((LANE, LANE), jnp.float32).at[:h2, :out_dim].set(params["w_fc_t"])
    bias_pack = jnp.zeros((3, LANE), jnp.float32)
    bias_pack = bias_pack.at[0, :h1].set(params["b1"].reshape(-1))
    bias_pack = bias_pack.at[1, :h2].set(params["b2"].reshape(-1))
    bias_pack = bias_pack.at[2, :out_dim].set(params["b_fc"].reshape(-1))

    # bf16 MXU inputs, f32 accumulation inside the kernel.
    a_bf = a_b.astype(jnp.bfloat16)
    x_bf = x_b.astype(jnp.bfloat16)
    w1_bf = params["w1"].astype(jnp.bfloat16)
    w2_bf = w2_pad.astype(jnp.bfloat16)
    wfc_bf = wfc_pad.astype(jnp.bfloat16)
    alpha = params["alpha"].reshape(1, 1)

    # VMEM budget: actual block bytes, double-buffered, with headroom; capped below the
    # v7x 64 MiB physical VMEM (v5e/v6e have 128 MiB, so the cap is conservative there).
    block_bytes = 2 * (
        gb * n * n * 2           # A_hat block (bf16)
        + gb * n * f_in * 2      # X block (bf16)
        + f_in * LANE * 2        # W1
        + 2 * LANE * LANE * 2    # W2, Wfc (padded)
        + 3 * LANE * 4           # packed biases (f32)
        + gb * n * LANE * 2)     # output block (bf16)
    vmem_limit = int(min(max(4 * block_bytes + (8 << 20), 16 << 20), 48 << 20))

    out_padded = pl.pallas_call(
        gcn_classifier_kernel,
        out_shape=jax.ShapeDtypeStruct((g_count, n, LANE), jnp.bfloat16),
        grid=(steps,),
        in_specs=[
            pl.BlockSpec((gb, n, n), lambda s: (s, 0, 0)),          # A_hat (Gb graphs)
            pl.BlockSpec((gb, n, f_in), lambda s: (s, 0, 0)),       # X (Gb graphs)
            pl.BlockSpec((f_in, LANE), lambda s: (0, 0)),           # W1 (shared)
            pl.BlockSpec((LANE, LANE), lambda s: (0, 0)),           # W2 padded (shared)
            pl.BlockSpec((LANE, LANE), lambda s: (0, 0)),           # Wfc^T padded (shared)
            pl.BlockSpec((3, LANE), lambda s: (0, 0)),              # packed biases (shared)
            pl.BlockSpec((1, 1), lambda s: (0, 0),
                         memory_space=pltpu.MemorySpace.SMEM),      # PReLU alpha
        ],
        out_specs=pl.BlockSpec((gb, n, LANE), lambda s: (s, 0, 0)),
        compiler_params=pltpu.CompilerParams(
            dimension_semantics=("parallel",),
            vmem_limit_bytes=vmem_limit,
        ),
    )(a_bf, x_bf, w1_bf, w2_bf, wfc_bf, bias_pack, alpha)

    return out_padded[:, :, :out_dim].astype(jnp.float32)


def reference_forward(x_b, a_b, params):
    """Pure-JAX reference with the same bf16-in / f32-accumulate numerics."""
    bf = jnp.bfloat16
    f32 = jnp.float32
    alpha = params["alpha"].reshape(())
    prelu = lambda v: jnp.where(v >= 0, v, alpha * v)
    a = a_b.astype(bf)

    ax = jnp.einsum("gij,gjf->gif", a, x_b.astype(bf), preferred_element_type=f32)
    h1 = jnp.einsum("gif,fh->gih", ax.astype(bf), params["w1"].astype(bf),
                    preferred_element_type=f32) + params["b1"]
    h1 = prelu(h1)
    xw2 = jnp.einsum("gih,hk->gik", h1.astype(bf), params["w2"].astype(bf),
                     preferred_element_type=f32)
    h2 = jnp.einsum("gij,gjk->gik", a, xw2.astype(bf),
                    preferred_element_type=f32) + params["b2"]
    h2 = prelu(h2)
    return jnp.einsum("gik,ko->gio", h2.astype(bf), params["w_fc_t"].astype(bf),
                      preferred_element_type=f32) + params["b_fc"]


def init_params(key, input_dim, output_dim, h1=128, h2=16):
    ks = jax.random.split(key, 6)

    def glorot(k, fan_in, fan_out):
        lim = (6.0 / (fan_in + fan_out)) ** 0.5
        return jax.random.uniform(k, (fan_in, fan_out), jnp.float32, -lim, lim)

    return {
        "w1": glorot(ks[0], input_dim, h1),
        "b1": jnp.zeros((1, h1), jnp.float32),
        "w2": glorot(ks[1], h1, h2),
        "b2": jnp.zeros((1, h2), jnp.float32),
        # nn.Linear(h2, output_dim): weight (output_dim, h2); stored transposed (h2, output_dim)
        "w_fc_t": glorot(ks[2], h2, output_dim),
        "b_fc": jax.random.uniform(ks[3], (1, output_dim), jnp.float32,
                                   -(1.0 / h2) ** 0.5, (1.0 / h2) ** 0.5),
        "alpha": jnp.full((1, 1), 0.25, jnp.float32),   # nn.PReLU() default init
    }


def make_edge_index(key, num_nodes, num_extra):
    """Deterministic small graph: directed ring + random chords, symmetrized."""
    ring_src = jnp.arange(num_nodes, dtype=jnp.int32)
    ring_dst = (ring_src + 1) % num_nodes
    ksrc, kdst = jax.random.split(key)
    ex_src = jax.random.randint(ksrc, (num_extra,), 0, num_nodes, dtype=jnp.int32)
    ex_dst = jax.random.randint(kdst, (num_extra,), 0, num_nodes, dtype=jnp.int32)
    src = jnp.concatenate([ring_src, ex_src])
    dst = jnp.concatenate([ring_dst, ex_dst])
    return jnp.stack([jnp.concatenate([src, dst]),
                      jnp.concatenate([dst, src])], axis=0)


if __name__ == "__main__":
    key = jax.random.PRNGKey(0)
    k_x, k_p, k_g = jax.random.split(key, 3)

    num_graphs = 16      # Gb=8 graphs per grid step -> M = 128 rows per MXU call, 2 grid steps
    num_nodes = 16
    input_dim = 32
    output_dim = 8

    x_b = jax.random.normal(k_x, (num_graphs, num_nodes, input_dim), jnp.float32)
    gkeys = jax.random.split(k_g, num_graphs)
    a_b = jnp.stack(
        [build_normalized_adjacency(make_edge_index(gk, num_nodes, 4), num_nodes)
         for gk in gkeys], axis=0)

    params = init_params(k_p, input_dim, output_dim)

    logits = gcn_classifier_forward(x_b, a_b, params)
    logits = jax.block_until_ready(logits)

    ref = reference_forward(x_b, a_b, params)
    assert logits.shape == (num_graphs, num_nodes, output_dim)
    assert jnp.allclose(logits, ref, atol=2e-2, rtol=2e-2), "mismatch vs reference"

    print("KERNEL_OK")
</pallas_src>

<mosaic_0001>
module attributes {stable_mosaic.version = 11 : i64} {
  func.func @gcn_classifier_kernel(%arg0: i32, %arg1: memref<8x16x16xbf16, #tpu.memory_space<vmem>>, %arg2: memref<8x16x32xbf16, #tpu.memory_space<vmem>>, %arg3: memref<32x128xbf16, #tpu.memory_space<vmem>>, %arg4: memref<128x128xbf16, #tpu.memory_space<vmem>>, %arg5: memref<128x128xbf16, #tpu.memory_space<vmem>>, %arg6: memref<3x128xf32, #tpu.memory_space<vmem>>, %arg7: memref<1x1xf32, #tpu.memory_space<smem>>, %arg8: memref<8x16x128xbf16, #tpu.memory_space<vmem>>) attributes {dimension_semantics = [#tpu.dimension_semantics<parallel>], iteration_bounds = array<i64: 2>, scalar_prefetch = 0 : i64, scratch_operands = 0 : i64, tpu.core_type = #tpu.core_type<tc>, window_params = [{transform_indices = @transform_0, window_bounds = array<i64: 8, 16, 16>}, {transform_indices = @transform_1, window_bounds = array<i64: 8, 16, 32>}, {pipeline_mode = #tpu.pipeline_mode<synchronous>, transform_indices = @transform_2, window_bounds = array<i64: 32, 128>}, {pipeline_mode = #tpu.pipeline_mode<synchronous>, transform_indices = @transform_3, window_bounds = array<i64: 128, 128>}, {pipeline_mode = #tpu.pipeline_mode<synchronous>, transform_indices = @transform_4, window_bounds = array<i64: 128, 128>}, {pipeline_mode = #tpu.pipeline_mode<synchronous>, transform_indices = @transform_5, window_bounds = array<i64: 3, 128>}, {transform_indices = @transform_6, window_bounds = array<i64: 1, 1>}, {transform_indices = @transform_7, window_bounds = array<i64: 8, 16, 128>}]} {
    %c0 = arith.constant 0 : index
    %c0_0 = arith.constant 0 : index
    %0 = memref.load %arg7[%c0, %c0_0] : memref<1x1xf32, #tpu.memory_space<smem>>
    %c0_1 = arith.constant 0 : index
    %c0_2 = arith.constant 0 : index
    %c0_3 = arith.constant 0 : index
    %1 = vector.load %arg1[%c0_1, %c0_2, %c0_3] : memref<8x16x16xbf16, #tpu.memory_space<vmem>>, vector<8x16x16xbf16>
    %c0_4 = arith.constant 0 : index
    %c0_5 = arith.constant 0 : index
    %c0_6 = arith.constant 0 : index
    %2 = vector.load %arg2[%c0_4, %c0_5, %c0_6] : memref<8x16x32xbf16, #tpu.memory_space<vmem>>, vector<8x16x32xbf16>
    "tpu.trace_start"() <{level = 10 : i32, message = "gij,gjf->gif"}> : () -> ()
    %cst = arith.constant dense<0.000000e+00> : vector<8x16x32xf32>
    %3 = tpu.matmul %1, %2, %cst {dimension_numbers = #tpu.dot_dimension_numbers<[2], [1], [1], [2], [0, 0, 0, 1, 1, 2], [0], [0]>} : vector<8x16x16xbf16>, vector<8x16x32xbf16>, vector<8x16x32xf32> -> vector<8x16x32xf32>
    "tpu.trace_stop"() : () -> ()
    %4 = vector.shape_cast %3 : vector<8x16x32xf32> to vector<128x32xf32>
    %5 = arith.truncf %4 : vector<128x32xf32> to vector<128x32xbf16>
    %c0_7 = arith.constant 0 : index
    %c0_8 = arith.constant 0 : index
    %6 = vector.load %arg3[%c0_7, %c0_8] : memref<32x128xbf16, #tpu.memory_space<vmem>>, vector<32x128xbf16>
    %cst_9 = arith.constant dense<0.000000e+00> : vector<128x128xf32>
    %7 = tpu.matmul %5, %6, %cst_9 {dimension_numbers = #tpu.dot_dimension_numbers<[1], [0], [0], [1], [0, 0, 1, 1], [], []>} : vector<128x32xbf16>, vector<32x128xbf16>, vector<128x128xf32> -> vector<128x128xf32>
    %c0_10 = arith.constant 0 : index
    %c0_11 = arith.constant 0 : index
    %8 = vector.load %arg6[%c0_10, %c0_11] : memref<3x128xf32, #tpu.memory_space<vmem>>, vector<1x128xf32>
    %9 = vector.broadcast %8 : vector<1x128xf32> to vector<128x128xf32>
    %10 = arith.addf %7, %9 : vector<128x128xf32>
    %cst_12 = arith.constant 0.000000e+00 : f32
    %11 = vector.broadcast %cst_12 : f32 to vector<128x128xf32>
    %12 = arith.cmpf oge, %10, %11 : vector<128x128xf32>
    %13 = vector.broadcast %0 : f32 to vector<128x128xf32>
    %14 = arith.mulf %13, %10 : vector<128x128xf32>
    %15 = arith.select %12, %10, %14 : vector<128x128xi1>, vector<128x128xf32>
    %16 = arith.truncf %15 : vector<128x128xf32> to vector<128x128xbf16>
    %c0_13 = arith.constant 0 : index
    %c0_14 = arith.constant 0 : index
    %17 = vector.load %arg4[%c0_13, %c0_14] : memref<128x128xbf16, #tpu.memory_space<vmem>>, vector<128x128xbf16>
    %cst_15 = arith.constant dense<0.000000e+00> : vector<128x128xf32>
    %18 = tpu.matmul %16, %17, %cst_15 {dimension_numbers = #tpu.dot_dimension_numbers<[1], [0], [0], [1], [0, 0, 1, 1], [], []>} : vector<128x128xbf16>, vector<128x128xbf16>, vector<128x128xf32> -> vector<128x128xf32>
    %19 = vector.shape_cast %18 : vector<128x128xf32> to vector<8x16x128xf32>
    %20 = arith.truncf %19 : vector<8x16x128xf32> to vector<8x16x128xbf16>
    "tpu.trace_start"() <{level = 10 : i32, message = "gij,gjk->gik"}> : () -> ()
    %cst_16 = arith.constant dense<0.000000e+00> : vector<8x16x128xf32>
    %21 = tpu.matmul %1, %20, %cst_16 {dimension_numbers = #tpu.dot_dimension_numbers<[2], [1], [1], [2], [0, 0, 0, 1, 1, 2], [0], [0]>} : vector<8x16x16xbf16>, vector<8x16x128xbf16>, vector<8x16x128xf32> -> vector<8x16x128xf32>
    "tpu.trace_stop"() : () -> ()
    %22 = vector.shape_cast %21 : vector<8x16x128xf32> to vector<128x128xf32>
    %c1 = arith.constant 1 : index
    %c0_17 = arith.constant 0 : index
    %23 = vector.load %arg6[%c1, %c0_17] : memref<3x128xf32, #tpu.memory_space<vmem>>, vector<1x128xf32>
    %24 = vector.broadcast %23 : vector<1x128xf32> to vector<128x128xf32>
    %25 = arith.addf %22, %24 : vector<128x128xf32>
    %cst_18 = arith.constant 0.000000e+00 : f32
    %26 = vector.broadcast %cst_18 : f32 to vector<128x128xf32>
    %27 = arith.cmpf oge, %25, %26 : vector<128x128xf32>
    %28 = vector.broadcast %0 : f32 to vector<128x128xf32>
    %29 = arith.mulf %28, %25 : vector<128x128xf32>
    %30 = arith.select %27, %25, %29 : vector<128x128xi1>, vector<128x128xf32>
    %31 = arith.truncf %30 : vector<128x128xf32> to vector<128x128xbf16>
    %c0_19 = arith.constant 0 : index
    %c0_20 = arith.constant 0 : index
    %32 = vector.load %arg5[%c0_19, %c0_20] : memref<128x128xbf16, #tpu.memory_space<vmem>>, vector<128x128xbf16>
    %cst_21 = arith.constant dense<0.000000e+00> : vector<128x128xf32>
    %33 = tpu.matmul %31, %32, %cst_21 {dimension_numbers = #tpu.dot_dimension_numbers<[1], [0], [0], [1], [0, 0, 1, 1], [], []>} : vector<128x128xbf16>, vector<128x128xbf16>, vector<128x128xf32> -> vector<128x128xf32>
    %c2 = arith.constant 2 : index
    %c0_22 = arith.constant 0 : index
    %34 = vector.load %arg6[%c2, %c0_22] : memref<3x128xf32, #tpu.memory_space<vmem>>, vector<1x128xf32>
    %35 = vector.broadcast %34 : vector<1x128xf32> to vector<128x128xf32>
    %36 = arith.addf %33, %35 : vector<128x128xf32>
    %37 = vector.shape_cast %36 : vector<128x128xf32> to vector<8x16x128xf32>
    %38 = arith.truncf %37 : vector<8x16x128xf32> to vector<8x16x128xbf16>
    %c0_23 = arith.constant 0 : index
    %c0_24 = arith.constant 0 : index
    %c0_25 = arith.constant 0 : index
    %39 = vector.load %arg8[%c0_23, %c0_24, %c0_25] : memref<8x16x128xbf16, #tpu.memory_space<vmem>>, vector<8x16x128xbf16>
    tpu.vector_store %arg8[%c0_23, %c0_24, %c0_25], %38 {strides = array<i32>} : memref<8x16x128xbf16, #tpu.memory_space<vmem>>, vector<8x16x128xbf16>,
    return
  }
  func.func @transform_0(%arg0: i32) -> (i32, i32, i32) {
    %c0_i32 = arith.constant 0 : i32
    %c0_i32_0 = arith.constant 0 : i32
    %c0_i32_1 = arith.constant 0 : i32
    return %arg0, %c0_i32, %c0_i32_0 : i32, i32, i32
  }
  func.func @transform_1(%arg0: i32) -> (i32, i32, i32) {
    %c0_i32 = arith.constant 0 : i32
    %c0_i32_0 = arith.constant 0 : i32
    %c0_i32_1 = arith.constant 0 : i32
    return %arg0, %c0_i32, %c0_i32_0 : i32, i32, i32
  }
  func.func @transform_2(%arg0: i32) -> (i32, i32) {
    %c0_i32 = arith.constant 0 : i32
    %c0_i32_0 = arith.constant 0 : i32
    %c0_i32_1 = arith.constant 0 : i32
    return %c0_i32, %c0_i32_0 : i32, i32
  }
  func.func @transform_3(%arg0: i32) -> (i32, i32) {
    %c0_i32 = arith.constant 0 : i32
    %c0_i32_0 = arith.constant 0 : i32
    %c0_i32_1 = arith.constant 0 : i32
    return %c0_i32, %c0_i32_0 : i32, i32
  }
  func.func @transform_4(%arg0: i32) -> (i32, i32) {
    %c0_i32 = arith.constant 0 : i32
    %c0_i32_0 = arith.constant 0 : i32
    %c0_i32_1 = arith.constant 0 : i32
    return %c0_i32, %c0_i32_0 : i32, i32
  }
  func.func @transform_5(%arg0: i32) -> (i32, i32) {
    %c0_i32 = arith.constant 0 : i32
    %c0_i32_0 = arith.constant 0 : i32
    %c0_i32_1 = arith.constant 0 : i32
    return %c0_i32, %c0_i32_0 : i32, i32
  }
  func.func @transform_6(%arg0: i32) -> (i32, i32) {
    %c0_i32 = arith.constant 0 : i32
    %c0_i32_0 = arith.constant 0 : i32
    %c0_i32_1 = arith.constant 0 : i32
    return %c0_i32, %c0_i32_0 : i32, i32
  }
  func.func @transform_7(%arg0: i32) -> (i32, i32, i32) {
    %c0_i32 = arith.constant 0 : i32
    %c0_i32_0 = arith.constant 0 : i32
    %c0_i32_1 = arith.constant 0 : i32
    return %arg0, %c0_i32, %c0_i32_0 : i32, i32, i32
  }
}

</mosaic_0001>

<bundles_post_ra>
// kernel: tpu_custom_call.1
= control target key start
LH: loop header
LB: loop body
LE: loop exit
PB: predicated region body
PF: predicated region fallthrough
CT: control target
= control target key end

     0   :  { %s3339_s0 = inlined_call_operand.hbm [shape: bf16[16,16,16], index: 0, kind: input, shape index: {}]   ;;  %s3340_s1 = inlined_call_operand.hbm [shape: bf16[16,16,32], index: 1, kind: input, shape index: {}]   ;;  %s3341_s2 = inlined_call_operand.hbm [shape: bf16[32,128], index: 2, kind: input, shape index: {}]   ;;  %s3342_s3 = inlined_call_operand.hbm [shape: bf16[128,128], index: 3, kind: input, shape index: {}]   ;;  %s3343_s4 = inlined_call_operand.hbm [shape: bf16[128,128], index: 4, kind: input, shape index: {}]   ;;  %s3344_s5 = inlined_call_operand.vmem [shape: f32[3,128], index: 5, kind: input, shape index: {}]   ;;  %s3345_s6 = inlined_call_operand.<no memory space> [shape: f32[1,1], index: 6, kind: input, shape index: {}]   ;;  %s3346_s7 = inlined_call_operand.hbm [shape: bf16[16,16,128], index: 7, kind: output, shape index: {}]  }
   0x1   :  { %3354 = sst [smem:[#allocation19_spill]] %s3339_s0 }
   0x2   :  { %3355 = sst [smem:[#allocation20_spill]] %s3341_s2 }
   0x3   :  { %3356 = sst [smem:[#allocation21_spill]] %s3342_s3 }
   0x4   :  { %3357 = sst [smem:[#allocation22_spill]] %s3343_s4 }
   0x5   :  { %12 = sst [smem:[#allocation2]] %s3345_s6 }
   0x6   :  { %13 = vsyncpa [#allocation4], 0 }
   0x7   :  { %15 = vsyncpa [#allocation4 + $0x1], 0 }
   0x8   :  { %16 = vsyncpa [#allocation7], 0 }
   0x9   :  { %18 = vsyncpa [#allocation7 + $0x1], 0 }
   0xa   :  { %19 = vsyncpa [#allocation10], 0 }
   0xb   :  { %20 = vsyncpa [#allocation5], 0 }
   0xc   :  { %22 = vsyncpa [#allocation5 + $0x1], 0  ;;  %s2860_s26 = smov 0   ;;  %s2862_s27 = smov 0  }
   0xd   :  { %s2864_s28 = smov 0   ;;  %s2866_s29 = smov 0  }
   0xe LB: > { %s2881_s6 = sadd.s32 4294967295, %s2803_s29   ;;  %s2028_s30 = sadd.s32 4294967294, %s2803_s29   ;;  %s2803_s29 = sphi %s2866_s29, %s3383_s29   ;;  %s2799_s28 = sphi %s2864_s28, %s3382_s28   ;;  %s2795_s27 = sphi %s2862_s27, %s3381_s27   ;;  %s2791_s26 = sphi %s2860_s26, %s3380_s26  }
   0xf   : > { %p48_p0 = scmp.ne.s32.totalorder %s2795_s27, %s2791_s26  ;;  %p3347_p1 = scmp.eq.s32.totalorder %s2881_s6, 0 }
  0x10   : > { %p203_p2 = scmp.eq.s32.totalorder %s2881_s6, 1  ;;  %p209_p3 = scmp.eq.s32.totalorder %s2028_s30, 1 }
  0x11   : > { %p2890_p4 = por %p3347_p1, %p48_p0  ;;  %p2029_p5 = scmp.ge.s32.totalorder %s2803_s29, 1 }
  0x12   : > { %p2895_p6 = por %p209_p3, %p48_p0  ;;  %p216_p7 = scmp.lt.s32.totalorder %s2803_s29, 3 }
  0x13   : > { %s3358_s8 = scalar_select %p2890_p4, 1, 0 }
  0x14   : > { %s3359_s9 = scalar_select %p2895_p6, 1, 0 }
  0x15   : > { %p2900_p8 = pnand %p2029_p5, %p216_p7  ;;  %s2805_s11 = smov [#allocation8]  }
  0x16   : > { %s228_s12 = sshll.u32 %s2805_s11, 4  ;;  %s2806_s14 = smov [#allocation9]   ;;  %s229_s12 = int_to_ptr.vmem [resolvable:$true] %s228_s12 }
  0x17   : > { %p2489_p9 = pneg %p2900_p8  ;;  %s241_s15 = sshll.u32 %s2806_s14, 4  ;;  %s242_s15 = int_to_ptr.vmem [resolvable:$true] %s241_s15 }
  0x18   : > { %s2807_s16 = smov [#allocation11]   ;;  %s2604_s18 = scalar_lea.vmem %s229_s12, 256 }
  0x19   : > { %p2909_p11 = pnand %p2489_p9, %p3347_p1  ;;  %s254_s17 = sshll.u32 %s2807_s16, 4  ;;  %s255_s17 = int_to_ptr.vmem [resolvable:$true] %s254_s17 }
  0x1a   : > { %p2605_p13 = scmp.ne.s32.totalorder %s229_s12, %s2604_s18  ;;  %p2612_p5 = scmp.lt.s32.totalorder %s229_s12, %s229_s12 }
  0x1b   : > { %p2595_p12 = pneg %p2909_p11  ;;  %p2613_p7 = scmp.lt.s32.totalorder %s2604_s18, %s2604_s18 }
  0x1d   : > { %p2607_p0 = pnand %p2605_p13, %p2595_p12  ;;  %p2614_p9 = por %p2613_p7, %p2612_p5 }
  0x1f   : > { %p2608_p3 = pneg %p2607_p0 }
  0x21   : > { %p2615_p10 = pnand %p2614_p9, %p2608_p3 }
  0x23   : > { %2618 = shalt.err (!%p2615_p10)
}
  0x24   : > { %s3348_s19 = smov 64   ;;  %s3350_s20 = smov 4  }
  0x25   : > { %s3362_s2 = sld [smem:[#allocation20_spill]]  ;;  %s2630_s23 = scalar_lea.vmem %s242_s15, 1024 }
  0x26   : > { %p2631_p13 = scmp.ne.s32.totalorder %s242_s15, %s2630_s23  ;;  %p2638_p3 = scmp.lt.s32.totalorder %s242_s15, %s242_s15 }
  0x27   : > { %p2639_p10 = scmp.lt.s32.totalorder %s2630_s23, %s2630_s23 }
  0x28   : > { %p2633_p0 = pnand %p2631_p13, %p2595_p12 }
  0x29   : > { %p2640_p7 = por %p2639_p10, %p2638_p3 }
  0x2a   : > { %p2634_p5 = pneg %p2633_p0 }
  0x2b   : > { %2492 = dma.hbm_to_vmem [thread:$0]  (!%p2909_p11), %s3362_s2, 256, %s229_s12, [#allocation7], %s3348_s19, %s3348_s19, %s3350_s20  }
  0x2c   : > { %p2641_p9 = pnand %p2640_p7, %p2634_p5 }
  0x2e   : > { %2644 = shalt.err (!%p2641_p9)
}
  0x2f   : > { %s3363_s3 = sld [smem:[#allocation21_spill]]  ;;  %s2656_s30 = scalar_lea.vmem %s255_s17, 1024 }
  0x30   : > { %p2657_p1 = scmp.ne.s32.totalorder %s255_s17, %s2656_s30  ;;  %p2664_p3 = scmp.lt.s32.totalorder %s255_s17, %s255_s17 }
  0x31   : > { %p2665_p5 = scmp.lt.s32.totalorder %s2656_s30, %s2656_s30 }
  0x32   : > { %p2659_p13 = pnand %p2657_p1, %p2595_p12 }
  0x33   : > { %p2666_p10 = por %p2665_p5, %p2664_p3 }
  0x34   : > { %p2660_p0 = pneg %p2659_p13 }
  0x35   : > { %2495 = dma.hbm_to_vmem [thread:$0]  (!%p2909_p11), %s3363_s3, 1024, %s242_s15, [#allocation10], %s3348_s19, %s3348_s19, %s3350_s20  }
  0x36   : > { %p2667_p7 = pnand %p2666_p10, %p2660_p0 }
  0x38   : > { %2670 = shalt.err (!%p2667_p7)
}
  0x39   : > { %s3364_s4 = sld [smem:[#allocation22_spill]]  ;;  %s2949_s14 = sadd.s32 1, %s2803_s29  }
  0x3a   : > { %s32_s13 = ssub.s32 %s2803_s29, %s2949_s14  ;;  %s35_s15 = sadd.s32 1, %s2799_s28 }
  0x3b   : > { %p33_p1 = scmp.eq.s32.totalorder %s32_s13, 0  ;;  %p42_p12 = scmp.ne.s32.totalorder %s2799_s28, %s2795_s27 }
  0x3c   : > { %p43_p9 = scmp.eq.s32.totalorder %s2803_s29, 0  ;;  %p2513_p13 = scmp.lt.s32.totalorder %s2803_s29, 2 }
  0x3d   : > { %s2959_s16 = scalar_select %p33_p1, %s2799_s28, %s35_s15  }
  0x3e   : > { %p44_p0 = por %p43_p9, %p42_p12  ;;  %p2963_p3 = por %p203_p2, %p42_p12 }
  0x3f   : > { %2498 = dma.hbm_to_vmem [thread:$0]  (!%p2909_p11), %s3364_s4, 1024, %s255_s17, [#allocation10], %s3348_s19, %s3348_s19, %s3350_s20  }
  0x40   : > { %3365 = sst [smem:[#allocation18_spill]] %s2959_s16  ;;  %s274_s21 = sand.u32 1, %s2799_s28  }
  0x41   : > { %s3366_s18 = scalar_select %p2963_p3, 1, 0 }
  0x42   : > { %s2133_s22 = sshll.u32 %s2803_s29, 10  ;;  %s2969_s17 = sshll.u32 %s274_s21, 6 }
  0x43   : > { %s3367_s0 = sld [smem:[#allocation19_spill]]  ;;  %s278_s30 = scalar_lea.vmem [#allocation3], %s2969_s17 }
  0x44   : > { %s286_s11 = sshll.u32 %s278_s30, 4  ;;  %p2977_p11 = pnand %p2513_p13, %p44_p0  ;;  %s2981_s11 = int_to_ptr.vmem [resolvable:$true] %s286_s11 }
  0x45   : > { %s2986_s23 = scalar_lea.hbm %s3340_s1, %s2133_s22  ;;  %s2988_s24 = scalar_lea.sflag [#allocation4], %s274_s21 }
  0x46   : > { %p2673_p5 = pneg %p2977_p11 }
  0x49   : > { %s2974_s25 = scalar_lea.hbm %s3367_s0, %s2133_s22  ;;  %s2676_s2 = scalar_lea.hbm %s3367_s0, 2048 }
  0x4a   : > { %s2671_s19 = scalar_lea.hbm %s2974_s25, 1024  ;;  %p2677_p1 = scmp.lt.s32.totalorder %s2974_s25, %s3367_s0 }
  0x4b   : > { %p2672_p2 = scmp.ne.s32.totalorder %s2974_s25, %s2671_s19  ;;  %p2678_p12 = scmp.lt.s32.totalorder %s2676_s2, %s2671_s19 }
  0x4d   : > { %p2674_p10 = pnand %p2673_p5, %p2672_p2  ;;  %p2679_p9 = por %p2678_p12, %p2677_p1 }
  0x4f   : > { %p2675_p7 = pneg %p2674_p10 }
  0x51   : > { %p2680_p13 = pnand %p2679_p9, %p2675_p7 }
  0x53   : > { %2683 = shalt.err (!%p2680_p13)
}
  0x54   : > { %s2684_s21 = scalar_lea.vmem %s2981_s11, 1024  ;;  %s2810_s20 = smov [#allocation3]  }
  0x55   : > { %p2685_p0 = scmp.ne.s32.totalorder %s2981_s11, %s2684_s21  ;;  %s2689_s22 = sshll.u32 %s2810_s20, 4  ;;  %s2690_s22 = int_to_ptr.vmem [resolvable:$false] %s2689_s22 }
  0x56   : > { %s2691_s13 = scalar_lea.vmem %s2690_s22, 2048  ;;  %p2692_p6 = scmp.lt.s32.totalorder %s2981_s11, %s2690_s22 }
  0x57   : > { %p2687_p2 = pnand %p2685_p0, %p2673_p5  ;;  %p2693_p3 = scmp.lt.s32.totalorder %s2691_s13, %s2684_s21 }
  0x59   : > { %p2688_p10 = pneg %p2687_p2  ;;  %p2694_p4 = por %p2693_p3, %p2692_p6 }
  0x5b   : > { %p2695_p1 = pnand %p2694_p4, %p2688_p10 }
  0x5d   : > { %2698 = shalt.err (!%p2695_p1)
}
  0x5e   : > { %s3369_s2 = smov 4   ;;  %s3370_s3 = smov 64  }
  0x5f   : > { %2502 = dma.hbm_to_vmem [thread:$0]  (!%p2977_p11), %s2974_s25, 1024, %s2981_s11, %s2988_s24, %s3370_s3, %s3370_s3, %s3369_s2  }
  0x60   : > { %s300_s4 = scalar_lea.vmem [#allocation6], %s2969_s17  ;;  %s296_s15 = sand.u32 1, %s2803_s29  }
  0x61   : > { %s308_s19 = sshll.u32 %s300_s4, 4  ;;  %s297_s30 = scalar_lea.sflag [#allocation7], %s296_s15  ;;  %s3020_s19 = int_to_ptr.vmem [resolvable:$true] %s308_s19 }
  0x62   : > { %s2699_s21 = scalar_lea.hbm %s2986_s23, 1024  ;;  %s2704_s13 = scalar_lea.hbm %s3340_s1, 2048 }
  0x63   : > { %p2700_p4 = scmp.ne.s32.totalorder %s2986_s23, %s2699_s21  ;;  %p2705_p7 = scmp.lt.s32.totalorder %s2986_s23, %s3340_s1 }
  0x64   : > { %p2706_p12 = scmp.lt.s32.totalorder %s2704_s13, %s2699_s21 }
  0x65   : > { %p2702_p6 = pnand %p2700_p4, %p2673_p5 }
  0x66   : > { %p2707_p9 = por %p2706_p12, %p2705_p7 }
  0x67   : > { %p2703_p3 = pneg %p2702_p6 }
  0x69   : > { %p2708_p13 = pnand %p2707_p9, %p2703_p3 }
  0x6b   : > { %2711 = shalt.err (!%p2708_p13)
}
  0x6c   : > { %s2712_s17 = scalar_lea.vmem %s3020_s19, 1024  ;;  %s2811_s25 = smov [#allocation6]  }
  0x6d   : > { %p2713_p0 = scmp.ne.s32.totalorder %s3020_s19, %s2712_s17  ;;  %s2717_s11 = sshll.u32 %s2811_s25, 4  ;;  %s2718_s11 = int_to_ptr.vmem [resolvable:$false] %s2717_s11 }
  0x6e   : > { %s2719_s24 = scalar_lea.vmem %s2718_s11, 2048  ;;  %p2720_p1 = scmp.lt.s32.totalorder %s3020_s19, %s2718_s11 }
  0x6f   : > { %p2715_p2 = pnand %p2713_p0, %p2673_p5  ;;  %p2721_p4 = scmp.lt.s32.totalorder %s2719_s24, %s2712_s17 }
  0x71   : > { %p2716_p10 = pneg %p2715_p2  ;;  %p2722_p6 = por %p2721_p4, %p2720_p1 }
  0x73   : > { %p2723_p7 = pnand %p2722_p6, %p2716_p10 }
  0x75   : > { %2726 = shalt.err (!%p2723_p7)
}
  0x76   : > { %2505 = dma.hbm_to_vmem [thread:$0]  (!%p2977_p11), %s2986_s23, 1024, %s3020_s19, %s297_s30, %s3370_s3, %s3370_s3, %s3369_s2  }
  0x77   : > { %320 = sbr.rel (%p2900_p8) target bundleno = 1212 (0x4bc), region = 48  ;;  %s3050_s0 = sand.u32 (!%p2900_p8), 1, %s2795_s27  }
  0x78   : > { %s3053_s16 = sshll.u32 (!%p2900_p8), %s3050_s0, 6  ;;  %s323_s4 = scalar_lea.sflag (!%p2900_p8), [#allocation4], %s3050_s0 }
  0x79   : > { %s3057_s12 = scalar_lea.vmem (!%p2900_p8), [#allocation3], %s3053_s16  ;;  %p3371_p5 = scmp.ne.s32.totalorder (!%p2900_p8), %s3358_s8, 0 }
  0x7c   : > { %2770 = dma.done.wait (%p3371_p5), %s323_s4, 1024  }
  0x7d   : > { %2772 = vsyncadd (%p3371_p5), %s323_s4, 4294966272  ;;  %s331_s10 = sand.u32 1, %s2881_s6   ;;  %s3065_s2 = scalar_lea.vmem [#allocation6], %s3053_s16 }
  0x7e   : > { %s332_s23 = scalar_lea.sflag [#allocation7], %s331_s10 }
  0x7f   : > { %2774 = dma.done.wait (%p3371_p5), %s332_s23, 1024  }
  0x80   : > { %2776 = vsyncadd (%p3371_p5), %s332_s23, 4294966272  ;;  %p3372_p8 = scmp.eq.s32.totalorder %s2881_s6, 0 }
  0x82   : > { %2778 = dma.done.wait (%p3372_p8), [#allocation7], 256   ;;  %p3373_p11 = pmov %p3372_p8 }
  0x83   : > { %p3374_p3 = pmov %p3372_p8 }
  0x84   : > { %2780 = vsyncadd (%p3373_p11), [#allocation7], 4294967040 }
  0x85   : > { %2782 = dma.done.wait (%p3374_p3), [#allocation10], 2048   ;;  %p3375_p12 = pmov %p3374_p3 }
  0x86   : > { %v2812_v0 = vmov 0.0   ;;  %vm2813_vm0 = vmmov 0   ;;  %v2559_v1 = vld [vmem:[%s3065_s2] sm:$0xff]   ;;  %v2560_v2 = vld [vmem:[%s3065_s2 + $0x8] sm:$0xff]   ;;  %vm431_vm1 = vcmask 130048   ;;  %v2563_v5 = vld [vmem:[%s3065_s2 + $0x10] sm:$0xff]  }
  0x87   : > { %2784 = vsyncadd (%p3375_p12), [#allocation10], 4294965248  ;;  %2275 = vmatprep.subr.bf16.mxu0 %v2812_v0  ;;  %2281 = vmatprep.subr.bf16.mxu1 %v2812_v0  ;;  %v3088_v3 = vld [vmem:[%s3057_s12] sm:$0xff]   ;;  %v3091_v4 = vld [vmem:[%s3057_s12 + $0x8] sm:$0xff]   ;;  %vm890_vm2 = vcmask 261120   ;;  %s387_s8 = sld [smem:[#allocation2]] }
  0x88   : > { %2277 = vmatprep.mubr.msk.bf16.mxu0 %vm2813_vm0, %v2812_v0  ;;  %2283 = vmatprep.mubr.msk.bf16.mxu1 %vm2813_vm0, %v2812_v0  ;;  %v2564_v6 = vld [vmem:[%s3065_s2 + $0x18] sm:$0xff]   ;;  %v3104_v7 = vld [vmem:[%s3057_s12 + $0x10] sm:$0xff]   ;;  %v2567_v9 = vld [vmem:[%s3065_s2 + $0x20] sm:$0xff]   ;;  %s3279_s22 = scalar_lea.vmem [#allocation12], %s3053_s16  ;;  %s2153_s17 = sshll.u32 %s2881_s6, 10 }
  0x89   : > { %2276 = vmatpush3.bf16.msra.mxu0 %v2559_v1  ;;  %2282 = vmatpush3.bf16.msra.mxu1 %v2560_v2  ;;  %v3110_v8 = vld [vmem:[%s3057_s12 + $0x18] sm:$0xff]   ;;  %v2568_v10 = vld [vmem:[%s3065_s2 + $0x28] sm:$0xff]   ;;  %v3122_v11 = vld [vmem:[%s3057_s12 + $0x20] sm:$0xff]   ;;  %s1904_s13 = sshll.u32 %s3279_s22, 4  ;;  %s3294_s24 = scalar_lea.hbm %s3346_s7, %s2153_s17  ;;  %s3289_s13 = int_to_ptr.vmem [resolvable:$true] %s1904_s13 }
  0x8a   : > { %2287 = vmatprep.subr.bf16.mxu0 %v2812_v0  ;;  %2293 = vmatprep.subr.bf16.mxu1 %v2812_v0  ;;  %v3127_v12 = vld [vmem:[%s3057_s12 + $0x28] sm:$0xff]   ;;  %v2571_v13 = vld [vmem:[%s3065_s2 + $0x30] sm:$0xff]   ;;  %v2572_v14 = vld [vmem:[%s3065_s2 + $0x38] sm:$0xff]   ;;  %s1890_s16 = scalar_lea.sflag [#allocation5], %s3050_s0  ;;  %s2727_s4 = scalar_lea.vmem %s3289_s13, 1024 }
  0x8b   : > { %v3140_v15 = vld [vmem:[%s3057_s12 + $0x30] sm:$0xff]   ;;  %v3145_v16 = vld [vmem:[%s3057_s12 + $0x38] sm:$0xff]   ;;  %v2575_v17 = vld [vmem:[#allocation8 + $0x8] sm:$0xff]   ;;  %p2728_p9 = scmp.ne.s32.totalorder %s3289_s13, %s2727_s4  ;;  %p3376_p13 = scmp.ne.s32.totalorder %s3366_s18, 0 }
  0x8c   : > { %2278 = vmatmul.mubr.msk.bf16.vlgmr.msra.gmra.mxu0 %vm431_vm1, %v3088_v3  ;;  %2284 = vmatmul.mubr.msk.bf16.vlgmr.msra.gmra.mxu1 %vm431_vm1, %v3091_v4  ;;  %v2576_v18 = vld [vmem:[#allocation8] sm:$0xff]   ;;  %v2577_v19 = vld [vmem:[#allocation9 + $0x38] sm:$0xff]   ;;  %v2579_v21 = vld [vmem:[#allocation9 + $0x28] sm:$0xff]   ;;  %s2814_s6 = smov [#allocation12]  }
  0x8d   : > { %2288 = vmatpush3.bf16.msra.mxu0 %v2563_v5  ;;  %2294 = vmatpush3.bf16.msra.mxu1 %v2564_v6  ;;  %v2578_v20 = vld [vmem:[#allocation9 + $0x30] sm:$0xff]   ;;  %v2580_v22 = vld [vmem:[#allocation9 + $0x20] sm:$0xff]   ;;  %v2581_v23 = vld [vmem:[#allocation9 + $0x18] sm:$0xff]   ;;  %p2729_p0 = pnand %p2728_p9, %p3376_p13  ;;  %s2731_s12 = sshll.u32 %s2814_s6, 4  ;;  %s2732_s12 = int_to_ptr.vmem [resolvable:$false] %s2731_s12 }
  0x8e   : > { %2289 = vmatprep.mubr.msk.bf16.mxu0 %vm2813_vm0, %v2812_v0  ;;  %2295 = vmatprep.mubr.msk.bf16.mxu1 %vm2813_vm0, %v2812_v0  ;;  %v2582_v1 = vld [vmem:[#allocation9 + $0x10] sm:$0xff]   ;;  %v2583_v2 = vld [vmem:[#allocation9 + $0x8] sm:$0xff]   ;;  %v2584_v5 = vld [vmem:[#allocation9] sm:$0xff]   ;;  %s2733_s10 = scalar_lea.vmem %s2732_s12, 2048  ;;  %p2734_p10 = scmp.lt.s32.totalorder %s3289_s13, %s2732_s12 }
  0x8f   : > { %2299 = vmatprep.subr.bf16.mxu0 %v2812_v0  ;;  %2305 = vmatprep.subr.bf16.mxu1 %v2812_v0  ;;  %p2730_p2 = pneg %p2729_p0  ;;  %p2735_p1 = scmp.lt.s32.totalorder %s2733_s10, %s2727_s4 }
  0x91   : > { %p2736_p4 = por %p2735_p1, %p2734_p10 }
  0x93   : > { %p2737_p6 = pnand %p2736_p4, %p2730_p2 }
  0x94   : > { %2290 = vmatmul.mubr.msk.bf16.vlgmr.msra.gmra.mxu0 %vm431_vm1, %v3104_v7  ;;  %2296 = vmatmul.mubr.msk.bf16.vlgmr.msra.gmra.mxu1 %vm431_vm1, %v3110_v8 }
  0x95   : > { %2300 = vmatpush3.bf16.msra.mxu0 %v2567_v9  ;;  %2306 = vmatpush3.bf16.msra.mxu1 %v2568_v10  ;;  %v3164_v9 = vld [vmem:[%s3344_s5] ss:$0 sm:$0xff] }
  0x96   : > { %2301 = vmatprep.mubr.msk.bf16.mxu0 %vm2813_vm0, %v2812_v0  ;;  %2307 = vmatprep.mubr.msk.bf16.mxu1 %vm2813_vm0, %v2812_v0 }
  0x97   : > { %2311 = vmatprep.subr.bf16.mxu0 %v2812_v0  ;;  %2317 = vmatprep.subr.bf16.mxu1 %v2812_v0 }
  0x9c   : > { %2302 = vmatmul.mubr.msk.bf16.vlgmr.msra.gmra.mxu0 %vm431_vm1, %v3122_v11  ;;  %2308 = vmatmul.mubr.msk.bf16.vlgmr.msra.gmra.mxu1 %vm431_vm1, %v3127_v12 }
  0x9d   : > { %2312 = vmatpush3.bf16.msra.mxu0 %v2571_v13  ;;  %2318 = vmatpush3.bf16.msra.mxu1 %v2572_v14 }
  0x9e   : > { %2313 = vmatprep.mubr.msk.bf16.mxu0 %vm2813_vm0, %v2812_v0  ;;  %2319 = vmatprep.mubr.msk.bf16.mxu1 %vm2813_vm0, %v2812_v0 }
  0x9f   : > { %2323 = vmatprep.subr.bf16.mxu0 %v2575_v17  ;;  %2455 = vmatprep.subr.bf16.mxu1 %v2577_v19 }
  0xa4   : > { %2314 = vmatmul.mubr.msk.bf16.vlgmr.msra.gmra.mxu0 %vm431_vm1, %v3140_v15  ;;  %2320 = vmatmul.mubr.msk.bf16.vlgmr.msra.gmra.mxu1 %vm431_vm1, %v3145_v16 }
  0xa5   : > { %2324 = vmatpush3.bf16.msra.mxu0 %v2575_v17  ;;  %2463 = vmatpush3.bf16.msra.mxu1 %v2577_v19 }
  0xa6   : > { %2325 = vmatprep.subr.bf16.mxu0 %v2576_v18  ;;  %2456 = vmatprep.subr.bf16.mxu1 %v2578_v20 }
  0xa9   : > { %2326 = vmatpush3.bf16.msra.mxu0 %v2576_v18  ;;  %2464 = vmatpush3.bf16.msra.mxu1 %v2578_v20  ;;  %v3168_v18 = vstv %s387_s8 }
  0xaa   : > { %2343 = vmatprep.subr.bf16.mxu0 %v2577_v19  ;;  %2457 = vmatprep.subr.bf16.mxu1 %v2579_v21 }
  0xad   : > { %2465 = vmatpush3.bf16.msra.mxu1 %v2579_v21 }
  0xae   : > { %2458 = vmatprep.subr.bf16.mxu1 %v2580_v22 }
  0xb1   : > { %2466 = vmatpush3.bf16.msra.mxu1 %v2580_v22 }
  0xb2   : > { %2459 = vmatprep.subr.bf16.mxu1 %v2581_v23 }
  0xb5   : > { %2467 = vmatpush3.bf16.msra.mxu1 %v2581_v23 }
  0xb6   : > { %2460 = vmatprep.subr.bf16.mxu1 %v2582_v1 }
  0xb9   : > { %2468 = vmatpush3.bf16.msra.mxu1 %v2582_v1 }
  0xba   : > { %2461 = vmatprep.subr.bf16.mxu1 %v2583_v2 }
  0xbd   : > { %2469 = vmatpush3.bf16.msra.mxu1 %v2583_v2 }
  0xbe   : > { %2462 = vmatprep.subr.bf16.mxu1 %v2584_v5 }
  0xc1   : > { %2470 = vmatpush3.bf16.msra.mxu1 %v2584_v5 }
  0xc2   : > { %2399 = vmatprep.subr.bf16.mxu1 %v2812_v0 }
 0x14c   : > { %v469_v24 = vpop.f32.mrf.mxu0  ;;  %v524_v25 = vpop.f32.mrf.mxu1 }
 0x14e   : > { %v2279_v26 = vpop.f32.mrf.mxu0  ;;  %v2285_v27 = vpop.f32.mrf.mxu1 }
 0x150   : > { %v472_v28 = vpop.f32.mrf.mxu0  ;;  %v527_v30 = vpop.f32.mrf.mxu1 }
 0x151   : > { %v861_v29 = vpack.c.bf16 %v472_v28, %v469_v24  ;;  %v862_v31 = vpack.c.bf16 %v527_v30, %v524_v25 }
 0x152   : > { %v2280_v32 = vpop.f32.mrf.mxu0  ;;  %v2286_v33 = vpop.f32.mrf.mxu1 }
 0x153   : > { %2327 = vmatprep.mubr.msk.bf16.mxu0 %vm890_vm2, %v861_v29 }
 0x154   : > { %2328 = vmatmul.mubr.msk.bf16.vlgmr.msra.gmra.mxu0 %vm890_vm2, %v862_v31  ;;  %v579_v34 = vpop.f32.mrf.mxu0  ;;  %v634_v35 = vpop.f32.mrf.mxu1 }
 0x155   : > { %2344 = vmatpush3.bf16.msra.mxu0 %v2577_v19 }
 0x156   : > { %v2291_v36 = vpop.f32.mrf.mxu0  ;;  %2345 = vmatprep.subr.bf16.mxu0 %v2578_v20  ;;  %v2297_v37 = vpop.f32.mrf.mxu1 }
 0x158   : > { %v582_v38 = vpop.f32.mrf.mxu0  ;;  %v637_v40 = vpop.f32.mrf.mxu1 }
 0x159   : > { %v863_v39 = vpack.c.bf16 %v582_v38, %v579_v34  ;;  %2346 = vmatpush3.bf16.msra.mxu0 %v2578_v20  ;;  %v864_v41 = vpack.c.bf16 %v637_v40, %v634_v35 }
 0x15a   : > { %v2292_v42 = vpop.f32.mrf.mxu0  ;;  %2347 = vmatprep.subr.bf16.mxu0 %v2579_v21  ;;  %v2298_v43 = vpop.f32.mrf.mxu1 }
 0x15b   : > { %2331 = vmatprep.mubr.msk.bf16.mxu0 %vm890_vm2, %v863_v39 }
 0x15c   : > { %2332 = vmatmul.mubr.msk.bf16.gmra.mxu0 %vm890_vm2, %v864_v41  ;;  %v689_v44 = vpop.f32.mrf.mxu0  ;;  %v744_v45 = vpop.f32.mrf.mxu1 }
 0x15d   : > { %2348 = vmatpush3.bf16.msra.mxu0 %v2579_v21 }
 0x15e   : > { %v2303_v46 = vpop.f32.mrf.mxu0  ;;  %2349 = vmatprep.subr.bf16.mxu0 %v2580_v22  ;;  %v2309_v47 = vpop.f32.mrf.mxu1 }
 0x160   : > { %v692_v48 = vpop.f32.mrf.mxu0  ;;  %v747_v50 = vpop.f32.mrf.mxu1 }
 0x161   : > { %v865_v49 = vpack.c.bf16 %v692_v48, %v689_v44  ;;  %2350 = vmatpush3.bf16.msra.mxu0 %v2580_v22  ;;  %v866_v51 = vpack.c.bf16 %v747_v50, %v744_v45 }
 0x162   : > { %v2304_v52 = vpop.f32.mrf.mxu0  ;;  %2351 = vmatprep.subr.bf16.mxu0 %v2581_v23  ;;  %v2310_v53 = vpop.f32.mrf.mxu1 }
 0x163   : > { %2335 = vmatprep.mubr.msk.bf16.mxu0 %vm890_vm2, %v865_v49 }
 0x164   : > { %v799_v54 = vpop.f32.mrf.mxu0  ;;  %2336 = vmatmul.mubr.msk.bf16.gmra.mxu0 %vm890_vm2, %v866_v51  ;;  %v854_v55 = vpop.f32.mrf.mxu1 }
 0x165   : > { %2352 = vmatpush3.bf16.msra.mxu0 %v2581_v23 }
 0x166   : > { %v2315_v56 = vpop.f32.mrf.mxu0  ;;  %v2321_v57 = vpop.f32.mrf.mxu1  ;;  %2353 = vmatprep.subr.bf16.mxu0 %v2582_v1 }
 0x168   : > { %v802_v58 = vpop.f32.mrf.mxu0  ;;  %v857_v60 = vpop.f32.mrf.mxu1 }
 0x169   : > { %v867_v59 = vpack.c.bf16 %v802_v58, %v799_v54  ;;  %v868_v61 = vpack.c.bf16 %v857_v60, %v854_v55  ;;  %2354 = vmatpush3.bf16.msra.mxu0 %v2582_v1 }
 0x16a   : > { %v2316_v62 = vpop.f32.mrf.mxu0  ;;  %v2322_v63 = vpop.f32.mrf.mxu1  ;;  %2355 = vmatprep.subr.bf16.mxu0 %v2583_v2 }
 0x16b   : > { %2339 = vmatprep.mubr.msk.bf16.mxu0 %vm890_vm2, %v867_v59 }
 0x16c   : > { %2340 = vmatmul.mubr.msk.bf16.gmra.mxu0 %vm890_vm2, %v868_v61 }
 0x16d   : > { %2356 = vmatpush3.bf16.msra.mxu0 %v2583_v2 }
 0x16e   : > { %2357 = vmatprep.subr.bf16.mxu0 %v2584_v5 }
 0x171   : > { %2358 = vmatpush3.bf16.msra.mxu0 %v2584_v5 }
 0x172   : > { %2375 = vmatprep.subr.bf16.mxu0 %v2812_v0 }
 0x214   : > { %v2329_v6 = vpop.f32.mrf.mxu0 }
 0x215   : > { %v958_v14 = vadd.f32 %v2329_v6, %v3164_v9 }
 0x216   : > { %v949_v10 = vpop.f32.mrf.mxu0 }
 0x217   : > { %v950_v13 = vadd.f32 %v3164_v9, %v949_v10  ;;  %v1031_v24 = vmul.f32 %v3168_v18, %v958_v14  ;;  %vm1014_vm5 = vcmp.ge.f32.partialorder %v958_v14, 0.0 }
 0x218   : > { %v2330_v17 = vpop.f32.mrf.mxu0 }
 0x219   : > { %v961_v19 = vadd.f32 %v2330_v17, %v3164_v9  ;;  %v1029_v21 = vmul.f32 %v3168_v18, %v950_v13  ;;  %vm1012_vm4 = vcmp.ge.f32.partialorder %v950_v13, 0.0  ;;  %v1047_v33 = vsel %vm1014_vm5, %v958_v14, %v1031_v24 }
 0x21a   : > { %v952_v20 = vpop.f32.mrf.mxu0 }
 0x21b   : > { %vm1015_vm3 = vcmp.ge.f32.partialorder %v961_v19, 0.0  ;;  %v1032_v22 = vmul.f32 %v3168_v18, %v961_v19  ;;  %v953_v23 = vadd.f32 %v3164_v9, %v952_v20  ;;  %v1045_v30 = vsel %vm1012_vm4, %v950_v13, %v1029_v21 }
 0x21c   : > { %v2333_v25 = vpop.f32.mrf.mxu0 }
 0x21d   : > { %vm1013_vm6 = vcmp.ge.f32.partialorder %v953_v23, 0.0  ;;  %v1030_v26 = vmul.f32 %v3168_v18, %v953_v23  ;;  %v1048_v27 = vsel %vm1015_vm3, %v961_v19, %v1032_v22  ;;  %v974_v28 = vadd.f32 %v2333_v25, %v3164_v9 }
 0x21e   : > { %v965_v29 = vpop.f32.mrf.mxu0  ;;  %v1062_v36 = vpack.c.bf16 %v1048_v27, %v1047_v33 }
 0x21f   : > { %v1046_v31 = vsel %vm1013_vm6, %v953_v23, %v1030_v26  ;;  %v966_v32 = vadd.f32 %v3164_v9, %v965_v29  ;;  %v1035_v38 = vmul.f32 %v3168_v18, %v974_v28  ;;  %vm1018_vm8 = vcmp.ge.f32.partialorder %v974_v28, 0.0 }
 0x220   : > { %v1061_v34 = vpack.c.bf16 %v1046_v31, %v1045_v30  ;;  %v2334_v35 = vpop.f32.mrf.mxu0 }
 0x221   : > { %v977_v37 = vadd.f32 %v2334_v35, %v3164_v9  ;;  %v1033_v40 = vmul.f32 %v3168_v18, %v966_v32  ;;  %vm1016_vm9 = vcmp.ge.f32.partialorder %v966_v32, 0.0  ;;  %v1051_v50 = vsel %vm1018_vm8, %v974_v28, %v1035_v38 }
 0x222   : > { %2359 = vmatprep.mubr.bf16.mxu0 %v1061_v34  ;;  %v968_v39 = vpop.f32.mrf.mxu0 }
 0x223   : > { %2360 = vmatmul.mubr.bf16.vlgmr.msra.gmra.mxu0 %v1062_v36  ;;  %vm1019_vm7 = vcmp.ge.f32.partialorder %v977_v37, 0.0  ;;  %v1036_v41 = vmul.f32 %v3168_v18, %v977_v37  ;;  %v969_v42 = vadd.f32 %v3164_v9, %v968_v39  ;;  %v1049_v48 = vsel %vm1016_vm9, %v966_v32, %v1033_v40 }
 0x224   : > { %v2337_v43 = vpop.f32.mrf.mxu0 }
 0x225   : > { %vm1017_vm10 = vcmp.ge.f32.partialorder %v969_v42, 0.0  ;;  %v1034_v44 = vmul.f32 %v3168_v18, %v969_v42  ;;  %v990_v45 = vadd.f32 %v2337_v43, %v3164_v9  ;;  %v1052_v46 = vsel %vm1019_vm7, %v977_v37, %v1036_v41 }
 0x226   : > { %v981_v47 = vpop.f32.mrf.mxu0  ;;  %v1064_v54 = vpack.c.bf16 %v1052_v46, %v1051_v50 }
 0x227   : > { %v1050_v49 = vsel %vm1017_vm10, %v969_v42, %v1034_v44  ;;  %v982_v51 = vadd.f32 %v3164_v9, %v981_v47  ;;  %v1039_v53 = vmul.f32 %v3168_v18, %v990_v45  ;;  %vm1022_vm11 = vcmp.ge.f32.partialorder %v990_v45, 0.0 }
 0x228   : > { %v1063_v52 = vpack.c.bf16 %v1050_v49, %v1049_v48  ;;  %v2338_v55 = vpop.f32.mrf.mxu0 }
 0x229   : > { %vm1020_vm12 = vcmp.ge.f32.partialorder %v982_v51, 0.0  ;;  %v1037_v56 = vmul.f32 %v3168_v18, %v982_v51  ;;  %v993_v57 = vadd.f32 %v2338_v55, %v3164_v9  ;;  %v1055_v63 = vsel %vm1022_vm11, %v990_v45, %v1039_v53  ;;  %v2590_v55 = vld [vmem:[#allocation11 + $0x10] sm:$0xff]  }
 0x22a   : > { %2363 = vmatprep.mubr.bf16.mxu0 %v1063_v52  ;;  %v984_v58 = vpop.f32.mrf.mxu0 }
 0x22b   : > { %2364 = vmatmul.mubr.bf16.gmra.mxu0 %v1064_v54  ;;  %vm1023_vm13 = vcmp.ge.f32.partialorder %v993_v57, 0.0  ;;  %v1040_v59 = vmul.f32 %v3168_v18, %v993_v57  ;;  %v985_v60 = vadd.f32 %v3164_v9, %v984_v58  ;;  %v1053_v62 = vsel %vm1020_vm12, %v982_v51, %v1037_v56  ;;  %v2585_v51 = vld [vmem:[#allocation11 + $0x38] sm:$0xff]   ;;  %v2591_v56 = vld [vmem:[#allocation11 + $0x8] sm:$0xff]  }
 0x22c   : > { %v2341_v61 = vpop.f32.mrf.mxu0 }
 0x22d   : > { %vm1021_vm14 = vcmp.ge.f32.partialorder %v985_v60, 0.0  ;;  %v1038_v1 = vmul.f32 %v3168_v18, %v985_v60  ;;  %v1006_v2 = vadd.f32 %v2341_v61, %v3164_v9  ;;  %v1056_v5 = vsel %vm1023_vm13, %v993_v57, %v1040_v59 }
 0x22e   : > { %v997_v6 = vpop.f32.mrf.mxu0  ;;  %v1066_v14 = vpack.c.bf16 %v1056_v5, %v1055_v63 }
 0x22f   : > { %v998_v10 = vadd.f32 %v3164_v9, %v997_v6  ;;  %v1054_v13 = vsel %vm1021_vm14, %v985_v60, %v1038_v1  ;;  %v1043_v17 = vmul.f32 %v3168_v18, %v1006_v2  ;;  %vm1026_vm15 = vcmp.ge.f32.partialorder %v1006_v2, 0.0 }
 0x230   : > { %v2342_v19 = vpop.f32.mrf.mxu0  ;;  %v1065_v20 = vpack.c.bf16 %v1054_v13, %v1053_v62 }
 0x231   : > { %v1041_v21 = vmul.f32 %v3168_v18, %v998_v10  ;;  %v1009_v22 = vadd.f32 %v2342_v19, %v3164_v9  ;;  %vm1024_vm2 = vcmp.ge.f32.partialorder %v998_v10, 0.0  ;;  %v1059_v26 = vsel %vm1026_vm15, %v1006_v2, %v1043_v17 }
 0x232   : > { %v1000_v23 = vpop.f32.mrf.mxu0  ;;  %2367 = vmatprep.mubr.bf16.mxu0 %v1065_v20 }
 0x233   : > { %vm1027_vm3 = vcmp.ge.f32.partialorder %v1009_v22, 0.0  ;;  %v1044_v24 = vmul.f32 %v3168_v18, %v1009_v22  ;;  %v1001_v25 = vadd.f32 %v3164_v9, %v1000_v23  ;;  %2368 = vmatmul.mubr.bf16.gmra.mxu0 %v1066_v14  ;;  %v1057_v29 = vsel %vm1024_vm2, %v998_v10, %v1041_v21 }
 0x234   : > { %2377 = vmatprep.mubr.msk.bf16.mxu0 %vm2813_vm0, %v2812_v0 }
 0x235   : > { %v1060_v27 = vsel %vm1027_vm3, %v1009_v22, %v1044_v24  ;;  %vm1025_vm4 = vcmp.ge.f32.partialorder %v1001_v25, 0.0  ;;  %v1042_v28 = vmul.f32 %v3168_v18, %v1001_v25 }
 0x236   : > { %v1068_v30 = vpack.c.bf16 %v1060_v27, %v1059_v26 }
 0x237   : > { %v1058_v31 = vsel %vm1025_vm4, %v1001_v25, %v1042_v28 }
 0x238   : > { %v1067_v32 = vpack.c.bf16 %v1058_v31, %v1057_v29 }
 0x23a   : > { %2371 = vmatprep.mubr.bf16.mxu1 %v1067_v32 }
 0x23b   : > { %2372 = vmatmul.mubr.bf16.vlgmr.msra.gmra.mxu1 %v1068_v30 }
 0x23c   : > { %2401 = vmatprep.mubr.msk.bf16.mxu1 %vm2813_vm0, %v2812_v0 }
 0x2e3   : > { %v2361_v33 = vpop.f32.mrf.mxu0 }
 0x2e5   : > { %v1167_v9 = vpop.f32.mrf.mxu0 }
 0x2e7   : > { %v2362_v34 = vpop.f32.mrf.mxu0 }
 0x2e8   : > { %v1231_v39 = vpack.c.bf16 %v2362_v34, %v2361_v33 }
 0x2e9   : > { %v1170_v35 = vpop.f32.mrf.mxu0 }
 0x2ea   : > { %v1230_v36 = vpack.c.bf16 %v1170_v35, %v1167_v9 }
 0x2eb   : > { %v2365_v37 = vpop.f32.mrf.mxu0 }
 0x2ec   : > { %2376 = vmatpush3.bf16.msra.mxu0 %v1230_v36 }
 0x2ed   : > { %2381 = vmatprep.subr.bf16.mxu0 %v2812_v0  ;;  %v1183_v38 = vpop.f32.mrf.mxu0 }
 0x2ef   : > { %2378 = vmatmul.mubr.msk.bf16.vlgmr.msra.gmra.mxu0 %vm431_vm1, %v3088_v3  ;;  %v2366_v40 = vpop.f32.mrf.mxu0 }
 0x2f0   : > { %2382 = vmatpush3.bf16.msra.mxu0 %v1231_v39  ;;  %2383 = vmatprep.mubr.msk.bf16.mxu0 %vm2813_vm0, %v2812_v0  ;;  %v1233_v49 = vpack.c.bf16 %v2366_v40, %v2365_v37 }
 0x2f1   : > { %v1186_v41 = vpop.f32.mrf.mxu0  ;;  %2387 = vmatprep.subr.bf16.mxu0 %v2812_v0 }
 0x2f2   : > { %v1232_v44 = vpack.c.bf16 %v1186_v41, %v1183_v38 }
 0x2f3   : > { %v2369_v42 = vpop.f32.mrf.mxu0 }
 0x2f5   : > { %v1199_v43 = vpop.f32.mrf.mxu0 }
 0x2f7   : > { %2384 = vmatmul.mubr.msk.bf16.vlgmr.msra.gmra.mxu0 %vm431_vm1, %v3091_v4  ;;  %v2370_v45 = vpop.f32.mrf.mxu0 }
 0x2f8   : > { %2388 = vmatpush3.bf16.msra.mxu0 %v1232_v44  ;;  %2389 = vmatprep.mubr.msk.bf16.mxu0 %vm2813_vm0, %v2812_v0  ;;  %v1235_v53 = vpack.c.bf16 %v2370_v45, %v2369_v42 }
 0x2f9   : > { %2393 = vmatprep.subr.bf16.mxu0 %v2812_v0  ;;  %v1202_v3 = vpop.f32.mrf.mxu0 }
 0x2fa   : > { %v1234_v46 = vpack.c.bf16 %v1202_v3, %v1199_v43 }
 0x2fb   : > { %v2373_v47 = vpop.f32.mrf.mxu1 }
 0x2fc   : > { %2400 = vmatpush3.bf16.msra.mxu1 %v1234_v46 }
 0x2fd   : > { %v1215_v48 = vpop.f32.mrf.mxu1  ;;  %2411 = vmatprep.subr.bf16.mxu1 %v2812_v0 }
 0x2ff   : > { %2390 = vmatmul.mubr.msk.bf16.vlgmr.msra.gmra.mxu0 %vm431_vm1, %v3104_v7  ;;  %v2374_v50 = vpop.f32.mrf.mxu1  ;;  %2402 = vmatmul.mubr.msk.bf16.vlgmr.msra.gmra.mxu1 %vm431_vm1, %v3122_v11  ;;  %v2586_v7 = vld [vmem:[#allocation11 + $0x30] sm:$0xff]   ;;  %v2587_v11 = vld [vmem:[#allocation11 + $0x28] sm:$0xff]  }
 0x300   : > { %2394 = vmatpush3.bf16.msra.mxu0 %v1233_v49  ;;  %2395 = vmatprep.mubr.msk.bf16.mxu0 %vm2813_vm0, %v2812_v0  ;;  %v1237_v54 = vpack.c.bf16 %v2374_v50, %v2373_v47 }
 0x301   : > { %2405 = vmatprep.subr.bf16.mxu0 %v2812_v0  ;;  %v1218_v4 = vpop.f32.mrf.mxu1  ;;  %2413 = vmatprep.mubr.msk.bf16.mxu1 %vm2813_vm0, %v2812_v0 }
 0x302   : > { %v1236_v52 = vpack.c.bf16 %v1218_v4, %v1215_v48 }
 0x304   : > { %2412 = vmatpush3.bf16.msra.mxu1 %v1236_v52 }
 0x305   : > { %2423 = vmatprep.subr.bf16.mxu1 %v2585_v51 }
 0x307   : > { %2396 = vmatmul.mubr.msk.bf16.vlgmr.msra.gmra.mxu0 %vm431_vm1, %v3110_v8  ;;  %2414 = vmatmul.mubr.msk.bf16.vlgmr.msra.gmra.mxu1 %vm431_vm1, %v3140_v15  ;;  %v2588_v8 = vld [vmem:[#allocation11 + $0x20] sm:$0xff]   ;;  %v2589_v15 = vld [vmem:[#allocation11 + $0x18] sm:$0xff]  }
 0x308   : > { %2406 = vmatpush3.bf16.msra.mxu0 %v1235_v53  ;;  %2407 = vmatprep.mubr.msk.bf16.mxu0 %vm2813_vm0, %v2812_v0 }
 0x309   : > { %2417 = vmatprep.subr.bf16.mxu0 %v2812_v0  ;;  %2424 = vmatpush3.bf16.msra.mxu1 %v2585_v51 }
 0x30a   : > { %2425 = vmatprep.subr.bf16.mxu1 %v2586_v7 }
 0x30d   : > { %2426 = vmatpush3.bf16.msra.mxu1 %v2586_v7 }
 0x30e   : > { %2427 = vmatprep.subr.bf16.mxu1 %v2587_v11 }
 0x30f   : > { %2408 = vmatmul.mubr.msk.bf16.vlgmr.msra.gmra.mxu0 %vm431_vm1, %v3127_v12  ;;  %v2592_v12 = vld [vmem:[#allocation11] sm:$0xff]  }
 0x310   : > { %2418 = vmatpush3.bf16.msra.mxu0 %v1237_v54  ;;  %2419 = vmatprep.mubr.msk.bf16.mxu0 %vm2813_vm0, %v2812_v0  ;;  %v3241_v0 = vld [vmem:[%s3344_s5 + $0x1] ss:$0 sm:$0xff] }
 0x311   : > { %2428 = vmatpush3.bf16.msra.mxu1 %v2587_v11 }
 0x312   : > { %2429 = vmatprep.subr.bf16.mxu1 %v2588_v8 }
 0x315   : > { %2430 = vmatpush3.bf16.msra.mxu1 %v2588_v8 }
 0x316   : > { %2431 = vmatprep.subr.bf16.mxu1 %v2589_v15 }
 0x317   : > { %2420 = vmatmul.mubr.msk.bf16.vlgmr.msra.gmra.mxu0 %vm431_vm1, %v3145_v16 }
 0x319   : > { %2432 = vmatpush3.bf16.msra.mxu1 %v2589_v15 }
 0x31a   : > { %2433 = vmatprep.subr.bf16.mxu1 %v2590_v55 }
 0x31d   : > { %2434 = vmatpush3.bf16.msra.mxu1 %v2590_v55 }
 0x31e   : > { %2435 = vmatprep.subr.bf16.mxu1 %v2591_v56 }
 0x321   : > { %2436 = vmatpush3.bf16.msra.mxu1 %v2591_v56 }
 0x322   : > { %2437 = vmatprep.subr.bf16.mxu1 %v2592_v12 }
 0x325   : > { %2438 = vmatpush3.bf16.msra.mxu1 %v2592_v12 }
 0x3af   : > { %v1272_v16 = vpop.f32.mrf.mxu0 }
 0x3b0   : > { %v1571_v57 = vadd.f32 %v3241_v0, %v1272_v16 }
 0x3b1   : > { %v2379_v58 = vpop.f32.mrf.mxu0 }
 0x3b2   : > { %v1603_v60 = vmul.f32 %v1571_v57, %v3168_v18  ;;  %vm1587_vm0 = vcmp.ge.f32.partialorder %v1571_v57, 0.0 }
 0x3b3   : > { %v1275_v59 = vpop.f32.mrf.mxu0 }
 0x3b4   : > { %v1572_v61 = vadd.f32 %v3241_v0, %v1275_v59  ;;  %v1619_v5 = vsel %vm1587_vm0, %v1571_v57, %v1603_v60 }
 0x3b5   : > { %v2380_v62 = vpop.f32.mrf.mxu0 }
 0x3b6   : > { %vm1588_vm1 = vcmp.ge.f32.partialorder %v1572_v61, 0.0  ;;  %v1604_v63 = vmul.f32 %v1572_v61, %v3168_v18 }
 0x3b7   : > { %v1313_v1 = vpop.f32.mrf.mxu0 }
 0x3b8   : > { %v1573_v2 = vadd.f32 %v3241_v0, %v1313_v1  ;;  %v1620_v6 = vsel %vm1588_vm1, %v1572_v61, %v1604_v63 }
 0x3b9   : > { %v2385_v10 = vpop.f32.mrf.mxu0  ;;  %v1635_v13 = vpack.c.bf16 %v1620_v6, %v1619_v5 }
 0x3ba   : > { %v1605_v17 = vmul.f32 %v1573_v2, %v3168_v18  ;;  %vm1589_vm5 = vcmp.ge.f32.partialorder %v1573_v2, 0.0 }
 0x3bb   : > { %v1316_v14 = vpop.f32.mrf.mxu0  ;;  %2439 = vmatprep.mubr.bf16.mxu1 %v1635_v13 }
 0x3bc   : > { %v1574_v19 = vadd.f32 %v3241_v0, %v1316_v14  ;;  %v1621_v24 = vsel %vm1589_vm5, %v1573_v2, %v1605_v17 }
 0x3bd   : > { %v2386_v20 = vpop.f32.mrf.mxu0 }
 0x3be   : > { %vm1590_vm6 = vcmp.ge.f32.partialorder %v1574_v19, 0.0  ;;  %v1606_v21 = vmul.f32 %v1574_v19, %v3168_v18 }
 0x3bf   : > { %v1354_v22 = vpop.f32.mrf.mxu0  ;;  %v1436_v23 = vpop.f32.mrf.mxu1 }
 0x3c0   : > { %v1622_v25 = vsel %vm1590_vm6, %v1574_v19, %v1606_v21  ;;  %v1575_v26 = vadd.f32 %v3241_v0, %v1354_v22  ;;  %v1579_v9 = vadd.f32 %v3241_v0, %v1436_v23 }
 0x3c1   : > { %v1636_v27 = vpack.c.bf16 %v1622_v25, %v1621_v24  ;;  %v2391_v28 = vpop.f32.mrf.mxu0  ;;  %v2403_v29 = vpop.f32.mrf.mxu1 }
 0x3c2   : > { %v1607_v32 = vmul.f32 %v1575_v26, %v3168_v18  ;;  %vm1591_vm7 = vcmp.ge.f32.partialorder %v1575_v26, 0.0  ;;  %v1611_v41 = vmul.f32 %v1579_v9, %v3168_v18  ;;  %vm1595_vm9 = vcmp.ge.f32.partialorder %v1579_v9, 0.0 }
 0x3c3   : > { %v1357_v30 = vpop.f32.mrf.mxu0  ;;  %2440 = vmatmul.mubr.bf16.vlgmr.msra.gmra.mxu1 %v1636_v27  ;;  %v1439_v31 = vpop.f32.mrf.mxu1 }
 0x3c4   : > { %v1576_v33 = vadd.f32 %v3241_v0, %v1357_v30  ;;  %v1580_v35 = vadd.f32 %v3241_v0, %v1439_v31  ;;  %v1623_v42 = vsel %vm1591_vm7, %v1575_v26, %v1607_v32  ;;  %v1627_v4 = vsel %vm1595_vm9, %v1579_v9, %v1611_v41  ;;  %v2101_v30 = vld [vmem:[%s3344_s5 + $0x2] ss:$0 sm:$0xff] }
 0x3c5   : > { %v2392_v34 = vpop.f32.mrf.mxu0  ;;  %v2404_v36 = vpop.f32.mrf.mxu1 }
 0x3c6   : > { %vm1592_vm8 = vcmp.ge.f32.partialorder %v1576_v33, 0.0  ;;  %v1608_v37 = vmul.f32 %v1576_v33, %v3168_v18  ;;  %v1612_v3 = vmul.f32 %v1580_v35, %v3168_v18  ;;  %vm1596_vm10 = vcmp.ge.f32.partialorder %v1580_v35, 0.0 }
 0x3c7   : > { %v1395_v38 = vpop.f32.mrf.mxu0  ;;  %v1518_v39 = vpop.f32.mrf.mxu1 }
 0x3c8   : > { %v1577_v40 = vadd.f32 %v3241_v0, %v1395_v38  ;;  %v1624_v43 = vsel %vm1592_vm8, %v1576_v33, %v1608_v37  ;;  %v1583_v52 = vadd.f32 %v3241_v0, %v1518_v39  ;;  %v1628_v7 = vsel %vm1596_vm10, %v1580_v35, %v1612_v3 }
 0x3c9   : > { %v2397_v44 = vpop.f32.mrf.mxu0  ;;  %v1637_v45 = vpack.c.bf16 %v1624_v43, %v1623_v42  ;;  %v2415_v46 = vpop.f32.mrf.mxu1  ;;  %v1639_v12 = vpack.c.bf16 %v1628_v7, %v1627_v4 }
 0x3ca   : > { %v1609_v49 = vmul.f32 %v1577_v40, %v3168_v18  ;;  %vm1593_vm11 = vcmp.ge.f32.partialorder %v1577_v40, 0.0  ;;  %v1615_v58 = vmul.f32 %v1583_v52, %v3168_v18  ;;  %vm1599_vm13 = vcmp.ge.f32.partialorder %v1583_v52, 0.0 }
 0x3cb   : > { %v1398_v47 = vpop.f32.mrf.mxu0  ;;  %2443 = vmatprep.mubr.bf16.mxu1 %v1637_v45  ;;  %v1521_v48 = vpop.f32.mrf.mxu1 }
 0x3cc   : > { %v1578_v50 = vadd.f32 %v3241_v0, %v1398_v47  ;;  %v1584_v53 = vadd.f32 %v3241_v0, %v1521_v48  ;;  %v1625_v55 = vsel %vm1593_vm11, %v1577_v40, %v1609_v49  ;;  %v1631_v1 = vsel %vm1599_vm13, %v1583_v52, %v1615_v58 }
 0x3cd   : > { %v2398_v51 = vpop.f32.mrf.mxu0  ;;  %v2416_v11 = vpop.f32.mrf.mxu1 }
 0x3ce   : > { %vm1594_vm12 = vcmp.ge.f32.partialorder %v1578_v50, 0.0  ;;  %v1610_v54 = vmul.f32 %v1578_v50, %v3168_v18  ;;  %v1616_v59 = vmul.f32 %v1584_v53, %v3168_v18  ;;  %vm1600_vm14 = vcmp.ge.f32.partialorder %v1584_v53, 0.0 }
 0x3cf   : > { %v1477_v8 = vpop.f32.mrf.mxu0 }
 0x3d0   : > { %v1581_v15 = vadd.f32 %v3241_v0, %v1477_v8  ;;  %v1626_v56 = vsel %vm1594_vm12, %v1578_v50, %v1610_v54  ;;  %v1632_v2 = vsel %vm1600_vm14, %v1584_v53, %v1616_v59 }
 0x3d1   : > { %v2409_v16 = vpop.f32.mrf.mxu0  ;;  %v1638_v57 = vpack.c.bf16 %v1626_v56, %v1625_v55  ;;  %v1641_v17 = vpack.c.bf16 %v1632_v2, %v1631_v1 }
 0x3d2   : > { %v1613_v61 = vmul.f32 %v1581_v15, %v3168_v18  ;;  %vm1597_vm15 = vcmp.ge.f32.partialorder %v1581_v15, 0.0 }
 0x3d3   : > { %v1480_v60 = vpop.f32.mrf.mxu0  ;;  %2444 = vmatmul.mubr.bf16.gmra.mxu1 %v1638_v57 }
 0x3d4   : > { %v1582_v62 = vadd.f32 %v3241_v0, %v1480_v60  ;;  %2447 = vmatprep.mubr.bf16.mxu1 %v1639_v12  ;;  %v1629_v13 = vsel %vm1597_vm15, %v1581_v15, %v1613_v61 }
 0x3d5   : > { %v2410_v63 = vpop.f32.mrf.mxu0 }
 0x3d6   : > { %vm1598_vm2 = vcmp.ge.f32.partialorder %v1582_v62, 0.0  ;;  %v1614_v5 = vmul.f32 %v1582_v62, %v3168_v18 }
 0x3d7   : > { %v1559_v6 = vpop.f32.mrf.mxu0 }
 0x3d8   : > { %v1585_v10 = vadd.f32 %v3241_v0, %v1559_v6  ;;  %v1630_v14 = vsel %vm1598_vm2, %v1582_v62, %v1614_v5 }
 0x3d9   : > { %v2421_v19 = vpop.f32.mrf.mxu0  ;;  %v1640_v20 = vpack.c.bf16 %v1630_v14, %v1629_v13 }
 0x3da   : > { %v1617_v22 = vmul.f32 %v1585_v10, %v3168_v18  ;;  %vm1601_vm3 = vcmp.ge.f32.partialorder %v1585_v10, 0.0 }
 0x3db   : > { %v1562_v21 = vpop.f32.mrf.mxu0  ;;  %2448 = vmatmul.mubr.bf16.gmra.mxu1 %v1640_v20 }
 0x3dc   : > { %v1586_v23 = vadd.f32 %v3241_v0, %v1562_v21  ;;  %2451 = vmatprep.mubr.bf16.mxu1 %v1641_v17  ;;  %v1633_v26 = vsel %vm1601_vm3, %v1585_v10, %v1617_v22 }
 0x3dd   : > { %v2422_v24 = vpop.f32.mrf.mxu0 }
 0x3de   : > { %vm1602_vm4 = vcmp.ge.f32.partialorder %v1586_v23, 0.0  ;;  %v1618_v25 = vmul.f32 %v1586_v23, %v3168_v18 }
 0x3e0   : > { %v1634_v27 = vsel %vm1602_vm4, %v1586_v23, %v1618_v25 }
 0x3e1   : > { %v1642_v28 = vpack.c.bf16 %v1634_v27, %v1633_v26 }
 0x3e3   : > { %2452 = vmatmul.mubr.bf16.gmra.mxu1 %v1642_v28 }
 0x483   : > { %v2441_v29 = vpop.f32.mrf.mxu1 }
 0x484   : > { %v1755_v33 = vadd.f32 %v2441_v29, %v2101_v30 }
 0x485   : > { %v1746_v31 = vpop.f32.mrf.mxu1 }
 0x486   : > { %v1747_v34 = vadd.f32 %v2101_v30, %v1746_v31 }
 0x487   : > { %v2442_v32 = vpop.f32.mrf.mxu1 }
 0x488   : > { %v1758_v0 = vadd.f32 %v2442_v32, %v2101_v30 }
 0x489   : > { %v1749_v9 = vpop.f32.mrf.mxu1 }
 0x48a   : > { %v2162_v35 = vpack.c.bf16 %v1758_v0, %v1755_v33  ;;  %v1750_v36 = vadd.f32 %v2101_v30, %v1749_v9 }
 0x48c   : > { %2194 = vst [vmem:[%s3279_s22 + $0x8] sm:$0xff] %v2162_v35   ;;  %v2157_v18 = vpack.c.bf16 %v1750_v36, %v1747_v34 }
 0x48e   : > { %2158 = vst [vmem:[%s3279_s22] sm:$0xff] %v2157_v18  }
 0x493   : > { %v2445_v37 = vpop.f32.mrf.mxu1 }
 0x494   : > { %v1771_v40 = vadd.f32 %v2445_v37, %v2101_v30 }
 0x495   : > { %v1762_v38 = vpop.f32.mrf.mxu1 }
 0x496   : > { %v1763_v43 = vadd.f32 %v2101_v30, %v1762_v38 }
 0x497   : > { %v2446_v39 = vpop.f32.mrf.mxu1 }
 0x498   : > { %v1774_v41 = vadd.f32 %v2446_v39, %v2101_v30 }
 0x499   : > { %v1765_v42 = vpop.f32.mrf.mxu1 }
 0x49a   : > { %v2172_v44 = vpack.c.bf16 %v1774_v41, %v1771_v40  ;;  %v1766_v45 = vadd.f32 %v2101_v30, %v1765_v42 }
 0x49b   : > { %v2449_v3 = vpop.f32.mrf.mxu1 }
 0x49c   : > { %2196 = vst [vmem:[%s3279_s22 + $0x18] sm:$0xff] %v2172_v44   ;;  %v2167_v46 = vpack.c.bf16 %v1766_v45, %v1763_v43  ;;  %v1787_v49 = vadd.f32 %v2449_v3, %v2101_v30 }
 0x49d   : > { %v1778_v47 = vpop.f32.mrf.mxu1 }
 0x49e   : > { %2195 = vst [vmem:[%s3279_s22 + $0x10] sm:$0xff] %v2167_v46   ;;  %v1779_v51 = vadd.f32 %v2101_v30, %v1778_v47 }
 0x49f   : > { %v2450_v48 = vpop.f32.mrf.mxu1 }
 0x4a0   : > { %v1790_v50 = vadd.f32 %v2450_v48, %v2101_v30 }
 0x4a1   : > { %v1781_v4 = vpop.f32.mrf.mxu1 }
 0x4a2   : > { %v2182_v52 = vpack.c.bf16 %v1790_v50, %v1787_v49  ;;  %v1782_v53 = vadd.f32 %v2101_v30, %v1781_v4 }
 0x4a3   : > { %v2453_v7 = vpop.f32.mrf.mxu1 }
 0x4a4   : > { %2198 = vst [vmem:[%s3279_s22 + $0x28] sm:$0xff] %v2182_v52   ;;  %v2177_v11 = vpack.c.bf16 %v1782_v53, %v1779_v51  ;;  %v1803_v15 = vadd.f32 %v2453_v7, %v2101_v30 }
 0x4a5   : > { %v1794_v54 = vpop.f32.mrf.mxu1 }
 0x4a6   : > { %2197 = vst [vmem:[%s3279_s22 + $0x20] sm:$0xff] %v2177_v11   ;;  %v1795_v12 = vadd.f32 %v2101_v30, %v1794_v54 }
 0x4a7   : > { %v2454_v8 = vpop.f32.mrf.mxu1 }
 0x4a8   : > { %v1806_v55 = vadd.f32 %v2454_v8, %v2101_v30 }
 0x4a9   : > { %v1797_v56 = vpop.f32.mrf.mxu1 }
 0x4aa   : > { %v2192_v16 = vpack.c.bf16 %v1806_v55, %v1803_v15  ;;  %v1798_v57 = vadd.f32 %v2101_v30, %v1797_v56 }
 0x4ac   : > { %2200 = vst [vmem:[%s3279_s22 + $0x38] sm:$0xff] %v2192_v16   ;;  %v2187_v58 = vpack.c.bf16 %v1798_v57, %v1795_v12 }
 0x4ae   : > { %2199 = vst [vmem:[%s3279_s22 + $0x30] sm:$0xff] %v2187_v58  }
 0x4af   : > { %2740 = shalt.err (!%p2737_p6)
}
 0x4b0   : > { %s2741_s23 = scalar_lea.hbm %s3294_s24, 1024  ;;  %s2745_s3 = scalar_lea.hbm %s3346_s7, 2048 }
 0x4b1   : > { %p2742_p7 = scmp.ne.s32.totalorder %s3294_s24, %s2741_s23  ;;  %p2746_p11 = scmp.lt.s32.totalorder %s3294_s24, %s3346_s7 }
 0x4b2   : > { %p2747_p3 = scmp.lt.s32.totalorder %s2745_s3, %s2741_s23 }
 0x4b3   : > { %p2743_p5 = pnand %p2742_p7, %p3376_p13 }
 0x4b4   : > { %p2748_p12 = por %p2747_p3, %p2746_p11 }
 0x4b5   : > { %p2744_p8 = pneg %p2743_p5 }
 0x4b7   : > { %p2749_p9 = pnand %p2748_p12, %p2744_p8 }
 0x4b9   : > { %2752 = shalt.err (!%p2749_p9)
}
 0x4ba   : > { %s2815_s30 = smov 64   ;;  %s2816_s21 = smov 4  }
 0x4bb   : > { %2487 = dma.vmem_to_hbm [thread:$0]  (%p3376_p13), %s3289_s13, 1024, %s3294_s24, %s1890_s16, %s2815_s30, %s2815_s30, %s2816_s21  }
 0x4bc PF: > { %s1919_s20 = sand.u32 1, %s2791_s26   ;;  %p3377_p0 = scmp.ne.s32.totalorder %s3359_s9, 0 }
 0x4bd   : > { %p3378_p2 = scmp.ge.s32.totalorder %s2803_s29, 2  ;;  %s1920_s22 = scalar_lea.sflag [#allocation5], %s1919_s20 }
 0x4bf   : > { %p2507_p10 = pnand %p3378_p2, %p3377_p0 }
 0x4c1   : > { %p2508_p1 = pneg %p2507_p10 }
 0x4c3   : > { %2786 = dma.done.wait (%p2508_p1), %s1920_s22, 1024  }
 0x4c4   : > { %2788 = vsyncadd (%p2508_p1), %s1920_s22, 4294966272  ;;  %s3379_s17 = sld [smem:[#allocation18_spill]]  ;;  %p25_p4 = scmp.ge.s32.totalorder %s2949_s14, 4  }
 0x4c5   : > { %s3380_s26 = smov %s2795_s27  ;;  %s3381_s27 = smov %s2799_s28 }
 0x4c6   : > { %s3383_s29 = smov %s2949_s14  ;;  %27 = sbr.rel (!%p25_p4) target bundleno = 14 (0xe), region = 118 }
 0x4ca   : > { %s3382_s28 = smov %s3379_s17 }
 0x4cb   :  { %1925 = vsyncpa [#allocation4], 1 }
 0x4cc   :  { %1927 = vsyncpa [#allocation4 + $0x1], 1 }
 0x4cd   :  { %1928 = vsyncpa [#allocation7], 1 }
 0x4ce   :  { %1930 = vsyncpa [#allocation7 + $0x1], 1 }
 0x4cf   :  { %1931 = vsyncpa [#allocation10], 1 }
 0x4d0   :  { %1932 = vsyncpa [#allocation5], 1 }
 0x4d1   :  { %1934 = vsyncpa [#allocation5 + $0x1], 1 }

</bundles_post_ra>
